<compile_context>
chip_gen: v7x
topology: tpu7x:2x2x1
jax: 0.10.0
libtpu: 0.0.40
codegen_flags: <defaults>
</compile_context>

<pallas_src>
import functools

import jax
import jax.numpy as jnp
from jax.experimental import pallas as pl
from jax.experimental.pallas import tpu as pltpu

EPS = 1e-5


# --------------------------------------------------------------------------------------
# Kernel A: conv1 (k=K, stride=2) + BatchNorm1 -> hn1     (grid over Cout tiles)
# --------------------------------------------------------------------------------------
def _conv1_bn1_kernel(xe_ref, xo_ref, w1_ref, p_ref, hn1_ref,
                      *, K, pad, L1, CW, inv_cnt):
    f32 = jnp.float32
    NW = xe_ref.shape[1]
    xe = xe_ref[...]                       # (Cin, N*CW)  even phase  x[2j]
    xo = xo_ref[...]                       # (Cin, N*CW)  odd  phase  x[2j+1]

    # conv1: per-tap matmul with f32 accumulation (one wide un-batched MXU matmul per tap;
    # no im2col buffer).  Taps are lane rolls of the even/odd phases; rolled-in garbage only
    # ever lands in pad lanes, which are masked below.
    acc = None
    for k in range(K):
        off = k - pad
        src, d = (xe, off // 2) if off % 2 == 0 else (xo, (off - 1) // 2)
        tap = src if d == 0 else pltpu.roll(src, shift=(-d) % NW, axis=1)
        wk = w1_ref[k].astype(tap.dtype)                       # (Ct, Cin)
        part = jnp.dot(wk, tap, preferred_element_type=f32)    # (Ct, N*CW)
        acc = part if acc is None else acc + part

    # Valid lanes of every per-sample CW-wide chunk are [pad, pad+L1).
    col = jax.lax.broadcasted_iota(jnp.int32, (1, NW), 1) % CW
    mask = jnp.logical_and(col >= pad, col < pad + L1).astype(f32)

    # Train-mode BatchNorm1d (batch stats, biased variance), affine folded to scale/shift.
    # h is masked once and reused for both moments (no redundant mask re-application).
    h = acc * mask
    m = jnp.sum(h, axis=1, keepdims=True) * inv_cnt
    ex2 = jnp.sum(h * h, axis=1, keepdims=True) * inv_cnt
    # TODO(synk): single-pass E[x^2]-E[x]^2 can cancel for channels with |mean| >> std; a
    # shifted two-pass variance would be safer for arbitrary activation scales.
    var = jnp.maximum(ex2 - m * m, 0.0)
    scale = p_ref[:, 0:1] * jax.lax.rsqrt(var + EPS)           # gamma1 / sqrt(var+eps)
    shift = (p_ref[:, 1:2] - m * scale) * mask                 # zero in pad lanes
    hn1_ref[...] = (h * scale + shift).astype(hn1_ref.dtype)   # zero pad lanes -> conv2 padding


# --------------------------------------------------------------------------------------
# Kernel B: conv2 (k=K, stride=1) + BatchNorm2 + ReLU + skip(1x1,s=2) + ReLU -> out
# --------------------------------------------------------------------------------------
def _conv2_bn2_skip_kernel(hn1_ref, xe_ref, w2_ref, ws_ref, p_ref, out_ref,
                           *, K, pad, L1, CW, inv_cnt):
    f32 = jnp.float32
    NW = hn1_ref.shape[1]
    hn1 = hn1_ref[...]                     # (Cout, N*CW), exact zeros in pad lanes

    # conv2: per-tap matmul, full Cout contraction, f32 accumulation.
    acc = None
    for k in range(K):
        d = k - pad
        tap = hn1 if d == 0 else pltpu.roll(hn1, shift=(-d) % NW, axis=1)
        wk = w2_ref[k].astype(tap.dtype)                       # (Ct, Cout)
        part = jnp.dot(wk, tap, preferred_element_type=f32)
        acc = part if acc is None else acc + part

    col = jax.lax.broadcasted_iota(jnp.int32, (1, NW), 1) % CW
    mask = jnp.logical_and(col >= pad, col < pad + L1).astype(f32)

    h = acc * mask
    m = jnp.sum(h, axis=1, keepdims=True) * inv_cnt
    ex2 = jnp.sum(h * h, axis=1, keepdims=True) * inv_cnt
    var = jnp.maximum(ex2 - m * m, 0.0)
    scale = p_ref[:, 0:1] * jax.lax.rsqrt(var + EPS)           # gamma2 / sqrt(var+eps)
    shift = (p_ref[:, 1:2] - m * scale) * mask
    y_block = jnp.maximum(h * scale + shift, 0.0)              # block's trailing ReLU, 0 in pad

    # Skip path: 1x1 conv with stride 2 == dense matmul on the even phase.  The bias is
    # masked so the padded lanes of the kernel output stay exact zeros.
    xe = xe_ref[...]
    y_skip = jnp.dot(ws_ref[...].astype(xe.dtype), xe, preferred_element_type=f32)
    y_skip = y_skip + p_ref[:, 2:3] * mask

    y = jnp.maximum(y_block + y_skip, 0.0)                     # final ReLU of the module
    if pad:
        # Left-align valid lanes -> the host slice starts at lane 0 (aligned, no offset copy);
        # everything past L1 in each chunk is exact zero.
        y = pltpu.roll(y, shift=(-pad) % NW, axis=1)
    out_ref[...] = y.astype(out_ref.dtype)


# --------------------------------------------------------------------------------------
# Wrapper
# --------------------------------------------------------------------------------------
def _pick_channel_tile(cout):
    # Largest tile that is a multiple of 8 sublanes, divides Cout, and yields >= 2 grid steps
    # (v7x: both TensorCores; all gens: DMA/compute overlap via BlockSpec pipelining).
    # Can be overridden / swept via the channel_tile argument (deeper grids may help on v6e).
    if cout % 16 == 0:
        return cout // 2
    return cout


def _vmem_limit(resident_bytes):
    # Derive the scoped-VMEM cap from the actual resident buffers + headroom, gated by the
    # physical VMEM of the current generation (64 MiB on v7x, 128 MiB on v5e/v6e).
    try:
        cap = pltpu.get_tpu_info().vmem_capacity_bytes
    except Exception:
        cap = 64 * 1024 * 1024  # conservative (v7x) fallback
    want = int(1.5 * resident_bytes) + (8 << 20)
    return int(max(32 << 20, min(want, int(cap * 0.75))))


@functools.partial(jax.jit, static_argnames=("kernel_size", "stride", "use_bf16",
                                             "interm_bf16", "out_bf16", "channel_tile"))
def resnet_block_1d_stride(x, params, *, kernel_size=5, stride=2, use_bf16=True,
                           interm_bf16=None, out_bf16=None, channel_tile=None):
    """Forward of ResNetBlock1d_stride (train-mode BN).  x: (N, Cin, L) -> (N, Cout, L1)."""
    if interm_bf16 is None:
        interm_bf16 = use_bf16   # keep False on v5e (no native bf16 VPU); True on v6e/v7x
    if out_bf16 is None:
        out_bf16 = use_bf16

    N, Cin, L = x.shape
    w1, b1, g1, be1, w2, b2, g2, be2, ws, bs = params
    del b1, b2                               # conv biases cancel exactly inside the BatchNorms
    Cout = w1.shape[0]
    K = kernel_size
    pad = K // 2
    assert stride == 2 and K % 2 == 1, "kernel implements the module defaults (stride=2, odd k)"
    # TODO(synk): identity-skip variant (in_channels == out_channels) not implemented; the
    # module default constructs a strided 1x1-conv skip, which is what this kernel fuses.

    L1 = (L + 2 * pad - K) // stride + 1     # conv1 / block output length
    assert L1 == (L - 1) // stride + 1       # == skip output length

    LANE = 128
    CW = -(-(L1 + 2 * pad) // LANE) * LANE   # lane-dense per-sample chunk width (>=128)
    NW = N * CW

    in_dt = jnp.bfloat16 if use_bf16 else jnp.float32
    im_dt = jnp.bfloat16 if interm_bf16 else jnp.float32
    out_dt = jnp.bfloat16 if out_bf16 else jnp.float32

    tile = channel_tile if channel_tile is not None else _pick_channel_tile(Cout)
    assert Cout % tile == 0 and (tile == Cout or tile % 8 == 0), (Cout, tile)
    grid = (Cout // tile,)

    # ---- Input prep (one fused XLA pass under this jit, no host im2col): stride-2 phase
    #      split, channel-major relayout, zero pad lanes on each CW-wide per-sample chunk.
    xp = jnp.pad(x, ((0, 0), (0, 0), (0, 2 * L1 - L)))

    def place(z):                                            # (N, Cin, L1) -> (Cin, N*CW)
        z = jnp.transpose(z, (1, 0, 2))
        z = jnp.pad(z, ((0, 0), (0, 0), (pad, CW - pad - L1)))
        return z.reshape(Cin, NW).astype(in_dt)

    xe = place(xp[:, :, 0::2])                               # x[2j]   at lanes [pad, pad+L1)
    xo = place(xp[:, :, 1::2])                               # x[2j+1]

    # Weights as (K, Cout, C): each tap slice is a clean 2-D MXU operand (no in-kernel
    # lane-slicing of the contraction axis).
    w1t = jnp.transpose(w1, (2, 0, 1)).astype(in_dt)         # (K, Cout, Cin)
    w2t = jnp.transpose(w2, (2, 0, 1)).astype(in_dt)         # (K, Cout, Cout)
    wst = ws[:, :, 0].astype(in_dt)                          # (Cout, Cin)
    p_a = jnp.stack([g1, be1], axis=1).astype(jnp.float32)   # (Cout, 2): gamma1, beta1
    p_b = jnp.stack([g2, be2, bs], axis=1).astype(jnp.float32)   # (Cout, 3): gamma2, beta2, bs

    in_b = 2 if use_bf16 else 4
    im_b = 2 if interm_bf16 else 4
    ot_b = 2 if out_bf16 else 4
    inv_cnt = 1.0 / (N * L1)                                 # true BN element count

    # ---- Call A: conv1 + BN1 -> hn1   (Cout-parallel grid) ------------------------------
    bytes_a = (2 * 2 * Cin * NW * in_b          # xe, xo (double-buffered blocks)
               + 2 * K * tile * Cin * in_b      # w1 tile
               + 2 * tile * NW * im_b           # hn1 output tile
               + (2 * tile + Cin) * NW * 4)     # f32 accumulator / temps
    hn1 = pl.pallas_call(
        functools.partial(_conv1_bn1_kernel, K=K, pad=pad, L1=L1, CW=CW, inv_cnt=inv_cnt),
        out_shape=jax.ShapeDtypeStruct((Cout, NW), im_dt),
        grid_spec=pltpu.PrefetchScalarGridSpec(
            num_scalar_prefetch=0, grid=grid,
            in_specs=[
                pl.BlockSpec((Cin, NW), lambda i: (0, 0)),          # xe (resident across grid)
                pl.BlockSpec((Cin, NW), lambda i: (0, 0)),          # xo (resident across grid)
                pl.BlockSpec((K, tile, Cin), lambda i: (0, i, 0)),  # w1 tile
                pl.BlockSpec((tile, 2), lambda i: (i, 0)),          # BN1 params tile
            ],
            out_specs=pl.BlockSpec((tile, NW), lambda i: (i, 0))),
        compiler_params=pltpu.CompilerParams(
            dimension_semantics=("parallel",),
            vmem_limit_bytes=_vmem_limit(bytes_a)),
    )(xe, xo, w1t, p_a)

    # ---- Call B: conv2 + BN2 + skip + ReLU -> out   (Cout-parallel grid) -----------------
    # TODO(synk): if DMA is still exposed on v5e/v6e, sweep pipeline_mode=pl.Buffered(3) on
    # the weight tiles (not on v7x where the extra buffer eats the 64 MiB budget).
    bytes_b = (2 * Cout * NW * im_b             # hn1 (full, resident)
               + 2 * Cin * NW * in_b            # xe (skip path)
               + 2 * K * tile * Cout * in_b     # w2 tile
               + 2 * tile * NW * ot_b           # output tile
               + (3 * tile + Cout) * NW * 4)    # f32 accumulator / temps
    out2 = pl.pallas_call(
        functools.partial(_conv2_bn2_skip_kernel, K=K, pad=pad, L1=L1, CW=CW, inv_cnt=inv_cnt),
        out_shape=jax.ShapeDtypeStruct((Cout, NW), out_dt),
        grid_spec=pltpu.PrefetchScalarGridSpec(
            num_scalar_prefetch=0, grid=grid,
            in_specs=[
                pl.BlockSpec((Cout, NW), lambda i: (0, 0)),          # hn1 (full contraction)
                pl.BlockSpec((Cin, NW), lambda i: (0, 0)),           # xe for the skip conv
                pl.BlockSpec((K, tile, Cout), lambda i: (0, i, 0)),  # w2 tile
                pl.BlockSpec((tile, Cin), lambda i: (i, 0)),         # skip weight tile
                pl.BlockSpec((tile, 3), lambda i: (i, 0)),           # BN2 + skip-bias params
            ],
            out_specs=pl.BlockSpec((tile, NW), lambda i: (i, 0))),
        compiler_params=pltpu.CompilerParams(
            dimension_semantics=("parallel",),
            vmem_limit_bytes=_vmem_limit(bytes_b)),
    )(hn1, xe, w2t, wst, p_b)

    # ---- Epilogue (fused by XLA with the prep inside this jit): valid lanes are already
    #      left-aligned, so this is an aligned prefix slice + transpose back to NCL.
    out = out2.reshape(Cout, N, CW)[:, :, :L1]
    return jnp.transpose(out, (1, 0, 2))         # (N, Cout, L1), PyTorch layout


# --------------------------------------------------------------------------------------
# Pure-JAX reference mirroring the PyTorch forward (train mode, batch stats)
# --------------------------------------------------------------------------------------
def reference(x, params, *, kernel_size=5, stride=2):
    w1, b1, g1, be1, w2, b2, g2, be2, ws, bs = params
    pad = kernel_size // 2

    def conv1d(z, w, b, s, p):
        y = jax.lax.conv_general_dilated(z, w, (s,), [(p, p)],
                                         dimension_numbers=('NCH', 'OIH', 'NCH'))
        return y + b[None, :, None]

    def bn(z, g, be):
        m = jnp.mean(z, axis=(0, 2), keepdims=True)
        v = jnp.mean((z - m) ** 2, axis=(0, 2), keepdims=True)
        return (z - m) * jax.lax.rsqrt(v + EPS) * g[None, :, None] + be[None, :, None]

    h = bn(conv1d(x, w1, b1, stride, pad), g1, be1)
    h = bn(conv1d(h, w2, b2, 1, pad), g2, be2)
    h = jnp.maximum(h, 0.0)
    skip = conv1d(x, ws, bs, stride, 0)
    return jnp.maximum(h + skip, 0.0)


if __name__ == "__main__":
    N, Cin, L = 2, 4, 16
    Cout, K, STRIDE = 8, 5, 2

    key = jax.random.PRNGKey(0)
    ks = jax.random.split(key, 12)
    x = jax.random.normal(ks[0], (N, Cin, L), jnp.float32)

    w1 = 0.1 * jax.random.normal(ks[1], (Cout, Cin, K), jnp.float32)
    b1 = 0.1 * jax.random.normal(ks[2], (Cout,), jnp.float32)
    w2 = 0.1 * jax.random.normal(ks[3], (Cout, Cout, K), jnp.float32)
    b2 = 0.1 * jax.random.normal(ks[4], (Cout,), jnp.float32)
    ws = 0.1 * jax.random.normal(ks[5], (Cout, Cin, 1), jnp.float32)
    bs = 0.1 * jax.random.normal(ks[6], (Cout,), jnp.float32)
    g1 = 1.0 + 0.1 * jax.random.normal(ks[7], (Cout,), jnp.float32)
    be1 = 0.1 * jax.random.normal(ks[8], (Cout,), jnp.float32)
    g2 = 1.0 + 0.1 * jax.random.normal(ks[9], (Cout,), jnp.float32)
    be2 = 0.1 * jax.random.normal(ks[10], (Cout,), jnp.float32)
    params = (w1, b1, g1, be1, w2, b2, g2, be2, ws, bs)

    ref = reference(x, params, kernel_size=K, stride=STRIDE)

    # f32 end-to-end path: exact-semantics check.
    out_f32 = resnet_block_1d_stride(x, params, kernel_size=K, stride=STRIDE,
                                     use_bf16=False)
    out_f32 = jax.block_until_ready(out_f32)
    L1 = (L - 1) // STRIDE + 1
    assert out_f32.shape == ref.shape == (N, Cout, L1), (out_f32.shape, ref.shape)
    assert jnp.allclose(out_f32, ref, atol=5e-4, rtol=5e-4), \
        float(jnp.max(jnp.abs(out_f32 - ref)))

    # bf16 operands / intermediates / output (f32 accumulation + f32 BN stats): loose check.
    out_bf = resnet_block_1d_stride(x, params, kernel_size=K, stride=STRIDE,
                                    use_bf16=True)
    out_bf = jax.block_until_ready(out_bf)
    assert out_bf.shape == ref.shape
    assert jnp.allclose(out_bf.astype(jnp.float32), ref, atol=5e-2, rtol=5e-2), \
        float(jnp.max(jnp.abs(out_bf.astype(jnp.float32) - ref)))

    print("KERNEL_OK")
</pallas_src>

<mosaic_0001>
module attributes {stable_mosaic.version = 11 : i64} {
  func.func @_conv1_bn1_kernel(%arg0: i32, %arg1: memref<4x256xf32, #tpu.memory_space<vmem>>, %arg2: memref<4x256xf32, #tpu.memory_space<vmem>>, %arg3: memref<5x8x4xf32, #tpu.memory_space<vmem>>, %arg4: memref<8x2xf32, #tpu.memory_space<vmem>>, %arg5: memref<8x256xf32, #tpu.memory_space<vmem>>) attributes {dimension_semantics = [#tpu.dimension_semantics<parallel>], iteration_bounds = array<i64: 1>, scalar_prefetch = 0 : i64, scratch_operands = 0 : i64, tpu.core_type = #tpu.core_type<tc>, window_params = [{pipeline_mode = #tpu.pipeline_mode<synchronous>, transform_indices = @transform_0, window_bounds = array<i64: 4, 256>}, {pipeline_mode = #tpu.pipeline_mode<synchronous>, transform_indices = @transform_1, window_bounds = array<i64: 4, 256>}, {transform_indices = @transform_2, window_bounds = array<i64: 5, 8, 4>}, {transform_indices = @transform_3, window_bounds = array<i64: 8, 2>}, {transform_indices = @transform_4, window_bounds = array<i64: 8, 256>}]} {
    %c0 = arith.constant 0 : index
    %c0_0 = arith.constant 0 : index
    %0 = vector.load %arg1[%c0, %c0_0] : memref<4x256xf32, #tpu.memory_space<vmem>>, vector<4x256xf32>
    %c0_1 = arith.constant 0 : index
    %c0_2 = arith.constant 0 : index
    %1 = vector.load %arg2[%c0_1, %c0_2] : memref<4x256xf32, #tpu.memory_space<vmem>>, vector<4x256xf32>
    %c1_i32 = arith.constant 1 : i32
    %2 = tpu.dynamic_rotate %0 by %c1_i32 dim 1 : vector<4x256xf32>, i32 -> vector<4x256xf32>
    %c0_3 = arith.constant 0 : index
    %c0_4 = arith.constant 0 : index
    %c0_5 = arith.constant 0 : index
    %3 = vector.load %arg3[%c0_3, %c0_4, %c0_5] : memref<5x8x4xf32, #tpu.memory_space<vmem>>, vector<1x8x4xf32>
    %4 = vector.shape_cast %3 : vector<1x8x4xf32> to vector<8x4xf32>
    %cst = arith.constant dense<0.000000e+00> : vector<8x256xf32>
    %5 = tpu.matmul %4, %2, %cst {dimension_numbers = #tpu.dot_dimension_numbers<[1], [0], [0], [1], [0, 0, 1, 1], [], []>} : vector<8x4xf32>, vector<4x256xf32>, vector<8x256xf32> -> vector<8x256xf32>
    %c1_i32_6 = arith.constant 1 : i32
    %6 = tpu.dynamic_rotate %1 by %c1_i32_6 dim 1 : vector<4x256xf32>, i32 -> vector<4x256xf32>
    %c1 = arith.constant 1 : index
    %c0_7 = arith.constant 0 : index
    %c0_8 = arith.constant 0 : index
    %7 = vector.load %arg3[%c1, %c0_7, %c0_8] : memref<5x8x4xf32, #tpu.memory_space<vmem>>, vector<1x8x4xf32>
    %8 = vector.shape_cast %7 : vector<1x8x4xf32> to vector<8x4xf32>
    %cst_9 = arith.constant dense<0.000000e+00> : vector<8x256xf32>
    %9 = tpu.matmul %8, %6, %cst_9 {dimension_numbers = #tpu.dot_dimension_numbers<[1], [0], [0], [1], [0, 0, 1, 1], [], []>} : vector<8x4xf32>, vector<4x256xf32>, vector<8x256xf32> -> vector<8x256xf32>
    %10 = arith.addf %5, %9 : vector<8x256xf32>
    %c2 = arith.constant 2 : index
    %c0_10 = arith.constant 0 : index
    %c0_11 = arith.constant 0 : index
    %11 = vector.load %arg3[%c2, %c0_10, %c0_11] : memref<5x8x4xf32, #tpu.memory_space<vmem>>, vector<1x8x4xf32>
    %12 = vector.shape_cast %11 : vector<1x8x4xf32> to vector<8x4xf32>
    %cst_12 = arith.constant dense<0.000000e+00> : vector<8x256xf32>
    %13 = tpu.matmul %12, %0, %cst_12 {dimension_numbers = #tpu.dot_dimension_numbers<[1], [0], [0], [1], [0, 0, 1, 1], [], []>} : vector<8x4xf32>, vector<4x256xf32>, vector<8x256xf32> -> vector<8x256xf32>
    %14 = arith.addf %10, %13 : vector<8x256xf32>
    %c3 = arith.constant 3 : index
    %c0_13 = arith.constant 0 : index
    %c0_14 = arith.constant 0 : index
    %15 = vector.load %arg3[%c3, %c0_13, %c0_14] : memref<5x8x4xf32, #tpu.memory_space<vmem>>, vector<1x8x4xf32>
    %16 = vector.shape_cast %15 : vector<1x8x4xf32> to vector<8x4xf32>
    %cst_15 = arith.constant dense<0.000000e+00> : vector<8x256xf32>
    %17 = tpu.matmul %16, %1, %cst_15 {dimension_numbers = #tpu.dot_dimension_numbers<[1], [0], [0], [1], [0, 0, 1, 1], [], []>} : vector<8x4xf32>, vector<4x256xf32>, vector<8x256xf32> -> vector<8x256xf32>
    %18 = arith.addf %14, %17 : vector<8x256xf32>
    %c255_i32 = arith.constant 255 : i32
    %19 = tpu.dynamic_rotate %0 by %c255_i32 dim 1 : vector<4x256xf32>, i32 -> vector<4x256xf32>
    %c4 = arith.constant 4 : index
    %c0_16 = arith.constant 0 : index
    %c0_17 = arith.constant 0 : index
    %20 = vector.load %arg3[%c4, %c0_16, %c0_17] : memref<5x8x4xf32, #tpu.memory_space<vmem>>, vector<1x8x4xf32>
    %21 = vector.shape_cast %20 : vector<1x8x4xf32> to vector<8x4xf32>
    %cst_18 = arith.constant dense<0.000000e+00> : vector<8x256xf32>
    %22 = tpu.matmul %21, %19, %cst_18 {dimension_numbers = #tpu.dot_dimension_numbers<[1], [0], [0], [1], [0, 0, 1, 1], [], []>} : vector<8x4xf32>, vector<4x256xf32>, vector<8x256xf32> -> vector<8x256xf32>
    %23 = arith.addf %18, %22 : vector<8x256xf32>
    %24 = tpu.iota {dimensions = array<i32: 1>} : vector<1x256xi32>
    %c128_i32 = arith.constant 128 : i32
    %c0_i32 = arith.constant 0 : i32
    %25 = arith.cmpi eq, %c128_i32, %c0_i32 : i32
    %c1_i32_19 = arith.constant 1 : i32
    %26 = arith.select %25, %c1_i32_19, %c128_i32 : i32
    %27 = vector.broadcast %26 : i32 to vector<1x256xi32>
    %28 = arith.remsi %24, %27 : vector<1x256xi32>
    %c0_i32_20 = arith.constant 0 : i32
    %29 = vector.broadcast %c0_i32_20 : i32 to vector<1x256xi32>
    %30 = arith.cmpi ne, %28, %29 : vector<1x256xi32>
    %c0_i32_21 = arith.constant 0 : i32
    %31 = vector.broadcast %c0_i32_21 : i32 to vector<1x256xi32>
    %32 = arith.cmpi slt, %28, %31 : vector<1x256xi32>
    %c0_i32_22 = arith.constant 0 : i32
    %33 = arith.cmpi slt, %26, %c0_i32_22 : i32
    %34 = vector.broadcast %33 : i1 to vector<1x256xi1>
    %35 = vector.broadcast %34 : vector<1x256xi1> to vector<1x256xi1>
    %36 = arith.xori %32, %35 : vector<1x256xi1>
    %37 = arith.andi %36, %30 : vector<1x256xi1>
    %38 = vector.broadcast %26 : i32 to vector<1x256xi32>
    %39 = arith.addi %28, %38 : vector<1x256xi32>
    %40 = arith.select %37, %39, %28 : vector<1x256xi1>, vector<1x256xi32>
    %c2_i32 = arith.constant 2 : i32
    %41 = vector.broadcast %c2_i32 : i32 to vector<1x256xi32>
    %42 = arith.cmpi sge, %40, %41 : vector<1x256xi32>
    %c10_i32 = arith.constant 10 : i32
    %43 = vector.broadcast %c10_i32 : i32 to vector<1x256xi32>
    %44 = arith.cmpi slt, %40, %43 : vector<1x256xi32>
    %45 = arith.andi %42, %44 : vector<1x256xi1>
    %46 = arith.extui %45 : vector<1x256xi1> to vector<1x256xi32>
    %47 = arith.sitofp %46 : vector<1x256xi32> to vector<1x256xf32>
    %48 = vector.broadcast %47 : vector<1x256xf32> to vector<8x256xf32>
    %49 = arith.mulf %23, %48 : vector<8x256xf32>
    %cst_23 = arith.constant dense<0.000000e+00> : vector<8xf32>
    %50 = vector.multi_reduction <add>, %49, %cst_23 [1] : vector<8x256xf32> to vector<8xf32>
    %51 = vector.shape_cast %50 : vector<8xf32> to vector<8x1xf32>
    %cst_24 = arith.constant 6.250000e-02 : f32
    %52 = vector.broadcast %cst_24 : f32 to vector<8x1xf32>
    %53 = arith.mulf %51, %52 : vector<8x1xf32>
    %54 = arith.mulf %49, %49 : vector<8x256xf32>
    %cst_25 = arith.constant dense<0.000000e+00> : vector<8xf32>
    %55 = vector.multi_reduction <add>, %54, %cst_25 [1] : vector<8x256xf32> to vector<8xf32>
    %56 = vector.shape_cast %55 : vector<8xf32> to vector<8x1xf32>
    %cst_26 = arith.constant 6.250000e-02 : f32
    %57 = vector.broadcast %cst_26 : f32 to vector<8x1xf32>
    %58 = arith.mulf %56, %57 : vector<8x1xf32>
    %59 = arith.mulf %53, %53 : vector<8x1xf32>
    %60 = arith.subf %58, %59 : vector<8x1xf32>
    %cst_27 = arith.constant 0.000000e+00 : f32
    %61 = vector.broadcast %cst_27 : f32 to vector<8x1xf32>
    %62 = arith.maximumf %60, %61 : vector<8x1xf32>
    %c0_28 = arith.constant 0 : index
    %c0_29 = arith.constant 0 : index
    %63 = vector.load %arg4[%c0_28, %c0_29] : memref<8x2xf32, #tpu.memory_space<vmem>>, vector<8x1xf32>
    %cst_30 = arith.constant 9.99999974E-6 : f32
    %64 = vector.broadcast %cst_30 : f32 to vector<8x1xf32>
    %65 = arith.addf %62, %64 : vector<8x1xf32>
    %66 = math.rsqrt %65 : vector<8x1xf32>
    %67 = arith.mulf %63, %66 : vector<8x1xf32>
    %c0_31 = arith.constant 0 : index
    %c1_32 = arith.constant 1 : index
    %68 = vector.load %arg4[%c0_31, %c1_32] : memref<8x2xf32, #tpu.memory_space<vmem>>, vector<8x1xf32>
    %69 = arith.mulf %53, %67 : vector<8x1xf32>
    %70 = arith.subf %68, %69 : vector<8x1xf32>
    %71 = vector.broadcast %70 : vector<8x1xf32> to vector<8x256xf32>
    %72 = vector.broadcast %47 : vector<1x256xf32> to vector<8x256xf32>
    %73 = arith.mulf %71, %72 : vector<8x256xf32>
    %74 = vector.broadcast %67 : vector<8x1xf32> to vector<8x256xf32>
    %75 = arith.mulf %49, %74 : vector<8x256xf32>
    %76 = arith.addf %75, %73 : vector<8x256xf32>
    %c0_33 = arith.constant 0 : index
    %c0_34 = arith.constant 0 : index
    %77 = vector.load %arg5[%c0_33, %c0_34] : memref<8x256xf32, #tpu.memory_space<vmem>>, vector<8x256xf32>
    tpu.vector_store %arg5[%c0_33, %c0_34], %76 {strides = array<i32>} : memref<8x256xf32, #tpu.memory_space<vmem>>, vector<8x256xf32>,
    return
  }
  func.func @transform_0(%arg0: i32) -> (i32, i32) {
    %c0_i32 = arith.constant 0 : i32
    %c0_i32_0 = arith.constant 0 : i32
    %c0_i32_1 = arith.constant 0 : i32
    return %c0_i32, %c0_i32_0 : i32, i32
  }
  func.func @transform_1(%arg0: i32) -> (i32, i32) {
    %c0_i32 = arith.constant 0 : i32
    %c0_i32_0 = arith.constant 0 : i32
    %c0_i32_1 = arith.constant 0 : i32
    return %c0_i32, %c0_i32_0 : i32, i32
  }
  func.func @transform_2(%arg0: i32) -> (i32, i32, i32) {
    %c0_i32 = arith.constant 0 : i32
    %c0_i32_0 = arith.constant 0 : i32
    %c0_i32_1 = arith.constant 0 : i32
    return %c0_i32, %arg0, %c0_i32_0 : i32, i32, i32
  }
  func.func @transform_3(%arg0: i32) -> (i32, i32) {
    %c0_i32 = arith.constant 0 : i32
    %c0_i32_0 = arith.constant 0 : i32
    return %arg0, %c0_i32 : i32, i32
  }
  func.func @transform_4(%arg0: i32) -> (i32, i32) {
    %c0_i32 = arith.constant 0 : i32
    %c0_i32_0 = arith.constant 0 : i32
    return %arg0, %c0_i32 : i32, i32
  }
}

module attributes {stable_mosaic.version = 11 : i64} {
  func.func @_conv2_bn2_skip_kernel(%arg0: i32, %arg1: memref<8x256xf32, #tpu.memory_space<vmem>>, %arg2: memref<4x256xf32, #tpu.memory_space<vmem>>, %arg3: memref<5x8x8xf32, #tpu.memory_space<vmem>>, %arg4: memref<8x4xf32, #tpu.memory_space<vmem>>, %arg5: memref<8x3xf32, #tpu.memory_space<vmem>>, %arg6: memref<8x256xf32, #tpu.memory_space<vmem>>) attributes {dimension_semantics = [#tpu.dimension_semantics<parallel>], iteration_bounds = array<i64: 1>, scalar_prefetch = 0 : i64, scratch_operands = 0 : i64, tpu.core_type = #tpu.core_type<tc>, window_params = [{pipeline_mode = #tpu.pipeline_mode<synchronous>, transform_indices = @transform_0, window_bounds = array<i64: 8, 256>}, {pipeline_mode = #tpu.pipeline_mode<synchronous>, transform_indices = @transform_1, window_bounds = array<i64: 4, 256>}, {transform_indices = @transform_2, window_bounds = array<i64: 5, 8, 8>}, {transform_indices = @transform_3, window_bounds = array<i64: 8, 4>}, {transform_indices = @transform_4, window_bounds = array<i64: 8, 3>}, {transform_indices = @transform_5, window_bounds = array<i64: 8, 256>}]} {
    %c0 = arith.constant 0 : index
    %c0_0 = arith.constant 0 : index
    %0 = vector.load %arg1[%c0, %c0_0] : memref<8x256xf32, #tpu.memory_space<vmem>>, vector<8x256xf32>
    %c2_i32 = arith.constant 2 : i32
    %1 = tpu.dynamic_rotate %0 by %c2_i32 dim 1 : vector<8x256xf32>, i32 -> vector<8x256xf32>
    %c0_1 = arith.constant 0 : index
    %c0_2 = arith.constant 0 : index
    %c0_3 = arith.constant 0 : index
    %2 = vector.load %arg3[%c0_1, %c0_2, %c0_3] : memref<5x8x8xf32, #tpu.memory_space<vmem>>, vector<1x8x8xf32>
    %3 = vector.shape_cast %2 : vector<1x8x8xf32> to vector<8x8xf32>
    %cst = arith.constant dense<0.000000e+00> : vector<8x256xf32>
    %4 = tpu.matmul %3, %1, %cst {dimension_numbers = #tpu.dot_dimension_numbers<[1], [0], [0], [1], [0, 0, 1, 1], [], []>} : vector<8x8xf32>, vector<8x256xf32>, vector<8x256xf32> -> vector<8x256xf32>
    %c1_i32 = arith.constant 1 : i32
    %5 = tpu.dynamic_rotate %0 by %c1_i32 dim 1 : vector<8x256xf32>, i32 -> vector<8x256xf32>
    %c1 = arith.constant 1 : index
    %c0_4 = arith.constant 0 : index
    %c0_5 = arith.constant 0 : index
    %6 = vector.load %arg3[%c1, %c0_4, %c0_5] : memref<5x8x8xf32, #tpu.memory_space<vmem>>, vector<1x8x8xf32>
    %7 = vector.shape_cast %6 : vector<1x8x8xf32> to vector<8x8xf32>
    %cst_6 = arith.constant dense<0.000000e+00> : vector<8x256xf32>
    %8 = tpu.matmul %7, %5, %cst_6 {dimension_numbers = #tpu.dot_dimension_numbers<[1], [0], [0], [1], [0, 0, 1, 1], [], []>} : vector<8x8xf32>, vector<8x256xf32>, vector<8x256xf32> -> vector<8x256xf32>
    %9 = arith.addf %4, %8 : vector<8x256xf32>
    %c2 = arith.constant 2 : index
    %c0_7 = arith.constant 0 : index
    %c0_8 = arith.constant 0 : index
    %10 = vector.load %arg3[%c2, %c0_7, %c0_8] : memref<5x8x8xf32, #tpu.memory_space<vmem>>, vector<1x8x8xf32>
    %11 = vector.shape_cast %10 : vector<1x8x8xf32> to vector<8x8xf32>
    %cst_9 = arith.constant dense<0.000000e+00> : vector<8x256xf32>
    %12 = tpu.matmul %11, %0, %cst_9 {dimension_numbers = #tpu.dot_dimension_numbers<[1], [0], [0], [1], [0, 0, 1, 1], [], []>} : vector<8x8xf32>, vector<8x256xf32>, vector<8x256xf32> -> vector<8x256xf32>
    %13 = arith.addf %9, %12 : vector<8x256xf32>
    %c255_i32 = arith.constant 255 : i32
    %14 = tpu.dynamic_rotate %0 by %c255_i32 dim 1 : vector<8x256xf32>, i32 -> vector<8x256xf32>
    %c3 = arith.constant 3 : index
    %c0_10 = arith.constant 0 : index
    %c0_11 = arith.constant 0 : index
    %15 = vector.load %arg3[%c3, %c0_10, %c0_11] : memref<5x8x8xf32, #tpu.memory_space<vmem>>, vector<1x8x8xf32>
    %16 = vector.shape_cast %15 : vector<1x8x8xf32> to vector<8x8xf32>
    %cst_12 = arith.constant dense<0.000000e+00> : vector<8x256xf32>
    %17 = tpu.matmul %16, %14, %cst_12 {dimension_numbers = #tpu.dot_dimension_numbers<[1], [0], [0], [1], [0, 0, 1, 1], [], []>} : vector<8x8xf32>, vector<8x256xf32>, vector<8x256xf32> -> vector<8x256xf32>
    %18 = arith.addf %13, %17 : vector<8x256xf32>
    %c254_i32 = arith.constant 254 : i32
    %19 = tpu.dynamic_rotate %0 by %c254_i32 dim 1 : vector<8x256xf32>, i32 -> vector<8x256xf32>
    %c4 = arith.constant 4 : index
    %c0_13 = arith.constant 0 : index
    %c0_14 = arith.constant 0 : index
    %20 = vector.load %arg3[%c4, %c0_13, %c0_14] : memref<5x8x8xf32, #tpu.memory_space<vmem>>, vector<1x8x8xf32>
    %21 = vector.shape_cast %20 : vector<1x8x8xf32> to vector<8x8xf32>
    %cst_15 = arith.constant dense<0.000000e+00> : vector<8x256xf32>
    %22 = tpu.matmul %21, %19, %cst_15 {dimension_numbers = #tpu.dot_dimension_numbers<[1], [0], [0], [1], [0, 0, 1, 1], [], []>} : vector<8x8xf32>, vector<8x256xf32>, vector<8x256xf32> -> vector<8x256xf32>
    %23 = arith.addf %18, %22 : vector<8x256xf32>
    %24 = tpu.iota {dimensions = array<i32: 1>} : vector<1x256xi32>
    %c128_i32 = arith.constant 128 : i32
    %c0_i32 = arith.constant 0 : i32
    %25 = arith.cmpi eq, %c128_i32, %c0_i32 : i32
    %c1_i32_16 = arith.constant 1 : i32
    %26 = arith.select %25, %c1_i32_16, %c128_i32 : i32
    %27 = vector.broadcast %26 : i32 to vector<1x256xi32>
    %28 = arith.remsi %24, %27 : vector<1x256xi32>
    %c0_i32_17 = arith.constant 0 : i32
    %29 = vector.broadcast %c0_i32_17 : i32 to vector<1x256xi32>
    %30 = arith.cmpi ne, %28, %29 : vector<1x256xi32>
    %c0_i32_18 = arith.constant 0 : i32
    %31 = vector.broadcast %c0_i32_18 : i32 to vector<1x256xi32>
    %32 = arith.cmpi slt, %28, %31 : vector<1x256xi32>
    %c0_i32_19 = arith.constant 0 : i32
    %33 = arith.cmpi slt, %26, %c0_i32_19 : i32
    %34 = vector.broadcast %33 : i1 to vector<1x256xi1>
    %35 = vector.broadcast %34 : vector<1x256xi1> to vector<1x256xi1>
    %36 = arith.xori %32, %35 : vector<1x256xi1>
    %37 = arith.andi %36, %30 : vector<1x256xi1>
    %38 = vector.broadcast %26 : i32 to vector<1x256xi32>
    %39 = arith.addi %28, %38 : vector<1x256xi32>
    %40 = arith.select %37, %39, %28 : vector<1x256xi1>, vector<1x256xi32>
    %c2_i32_20 = arith.constant 2 : i32
    %41 = vector.broadcast %c2_i32_20 : i32 to vector<1x256xi32>
    %42 = arith.cmpi sge, %40, %41 : vector<1x256xi32>
    %c10_i32 = arith.constant 10 : i32
    %43 = vector.broadcast %c10_i32 : i32 to vector<1x256xi32>
    %44 = arith.cmpi slt, %40, %43 : vector<1x256xi32>
    %45 = arith.andi %42, %44 : vector<1x256xi1>
    %46 = arith.extui %45 : vector<1x256xi1> to vector<1x256xi32>
    %47 = arith.sitofp %46 : vector<1x256xi32> to vector<1x256xf32>
    %48 = vector.broadcast %47 : vector<1x256xf32> to vector<8x256xf32>
    %49 = arith.mulf %23, %48 : vector<8x256xf32>
    %cst_21 = arith.constant dense<0.000000e+00> : vector<8xf32>
    %50 = vector.multi_reduction <add>, %49, %cst_21 [1] : vector<8x256xf32> to vector<8xf32>
    %51 = vector.shape_cast %50 : vector<8xf32> to vector<8x1xf32>
    %cst_22 = arith.constant 6.250000e-02 : f32
    %52 = vector.broadcast %cst_22 : f32 to vector<8x1xf32>
    %53 = arith.mulf %51, %52 : vector<8x1xf32>
    %54 = arith.mulf %49, %49 : vector<8x256xf32>
    %cst_23 = arith.constant dense<0.000000e+00> : vector<8xf32>
    %55 = vector.multi_reduction <add>, %54, %cst_23 [1] : vector<8x256xf32> to vector<8xf32>
    %56 = vector.shape_cast %55 : vector<8xf32> to vector<8x1xf32>
    %cst_24 = arith.constant 6.250000e-02 : f32
    %57 = vector.broadcast %cst_24 : f32 to vector<8x1xf32>
    %58 = arith.mulf %56, %57 : vector<8x1xf32>
    %59 = arith.mulf %53, %53 : vector<8x1xf32>
    %60 = arith.subf %58, %59 : vector<8x1xf32>
    %cst_25 = arith.constant 0.000000e+00 : f32
    %61 = vector.broadcast %cst_25 : f32 to vector<8x1xf32>
    %62 = arith.maximumf %60, %61 : vector<8x1xf32>
    %c0_26 = arith.constant 0 : index
    %c0_27 = arith.constant 0 : index
    %63 = vector.load %arg5[%c0_26, %c0_27] : memref<8x3xf32, #tpu.memory_space<vmem>>, vector<8x1xf32>
    %cst_28 = arith.constant 9.99999974E-6 : f32
    %64 = vector.broadcast %cst_28 : f32 to vector<8x1xf32>
    %65 = arith.addf %62, %64 : vector<8x1xf32>
    %66 = math.rsqrt %65 : vector<8x1xf32>
    %67 = arith.mulf %63, %66 : vector<8x1xf32>
    %c0_29 = arith.constant 0 : index
    %c1_30 = arith.constant 1 : index
    %68 = vector.load %arg5[%c0_29, %c1_30] : memref<8x3xf32, #tpu.memory_space<vmem>>, vector<8x1xf32>
    %69 = arith.mulf %53, %67 : vector<8x1xf32>
    %70 = arith.subf %68, %69 : vector<8x1xf32>
    %71 = vector.broadcast %70 : vector<8x1xf32> to vector<8x256xf32>
    %72 = vector.broadcast %47 : vector<1x256xf32> to vector<8x256xf32>
    %73 = arith.mulf %71, %72 : vector<8x256xf32>
    %74 = vector.broadcast %67 : vector<8x1xf32> to vector<8x256xf32>
    %75 = arith.mulf %49, %74 : vector<8x256xf32>
    %76 = arith.addf %75, %73 : vector<8x256xf32>
    %cst_31 = arith.constant 0.000000e+00 : f32
    %77 = vector.broadcast %cst_31 : f32 to vector<8x256xf32>
    %78 = arith.maximumf %76, %77 : vector<8x256xf32>
    %c0_32 = arith.constant 0 : index
    %c0_33 = arith.constant 0 : index
    %79 = vector.load %arg2[%c0_32, %c0_33] : memref<4x256xf32, #tpu.memory_space<vmem>>, vector<4x256xf32>
    %c0_34 = arith.constant 0 : index
    %c0_35 = arith.constant 0 : index
    %80 = vector.load %arg4[%c0_34, %c0_35] : memref<8x4xf32, #tpu.memory_space<vmem>>, vector<8x4xf32>
    %cst_36 = arith.constant dense<0.000000e+00> : vector<8x256xf32>
    %81 = tpu.matmul %80, %79, %cst_36 {dimension_numbers = #tpu.dot_dimension_numbers<[1], [0], [0], [1], [0, 0, 1, 1], [], []>} : vector<8x4xf32>, vector<4x256xf32>, vector<8x256xf32> -> vector<8x256xf32>
    %c0_37 = arith.constant 0 : index
    %c2_38 = arith.constant 2 : index
    %82 = vector.load %arg5[%c0_37, %c2_38] : memref<8x3xf32, #tpu.memory_space<vmem>>, vector<8x1xf32>
    %83 = vector.broadcast %82 : vector<8x1xf32> to vector<8x256xf32>
    %84 = vector.broadcast %47 : vector<1x256xf32> to vector<8x256xf32>
    %85 = arith.mulf %83, %84 : vector<8x256xf32>
    %86 = arith.addf %81, %85 : vector<8x256xf32>
    %87 = arith.addf %78, %86 : vector<8x256xf32>
    %cst_39 = arith.constant 0.000000e+00 : f32
    %88 = vector.broadcast %cst_39 : f32 to vector<8x256xf32>
    %89 = arith.maximumf %87, %88 : vector<8x256xf32>
    %c254_i32_40 = arith.constant 254 : i32
    %90 = tpu.dynamic_rotate %89 by %c254_i32_40 dim 1 : vector<8x256xf32>, i32 -> vector<8x256xf32>
    %c0_41 = arith.constant 0 : index
    %c0_42 = arith.constant 0 : index
    %91 = vector.load %arg6[%c0_41, %c0_42] : memref<8x256xf32, #tpu.memory_space<vmem>>, vector<8x256xf32>
    tpu.vector_store %arg6[%c0_41, %c0_42], %90 {strides = array<i32>} : memref<8x256xf32, #tpu.memory_space<vmem>>, vector<8x256xf32>,
    return
  }
  func.func @transform_0(%arg0: i32) -> (i32, i32) {
    %c0_i32 = arith.constant 0 : i32
    %c0_i32_0 = arith.constant 0 : i32
    %c0_i32_1 = arith.constant 0 : i32
    return %c0_i32, %c0_i32_0 : i32, i32
  }
  func.func @transform_1(%arg0: i32) -> (i32, i32) {
    %c0_i32 = arith.constant 0 : i32
    %c0_i32_0 = arith.constant 0 : i32
    %c0_i32_1 = arith.constant 0 : i32
    return %c0_i32, %c0_i32_0 : i32, i32
  }
  func.func @transform_2(%arg0: i32) -> (i32, i32, i32) {
    %c0_i32 = arith.constant 0 : i32
    %c0_i32_0 = arith.constant 0 : i32
    %c0_i32_1 = arith.constant 0 : i32
    return %c0_i32, %arg0, %c0_i32_0 : i32, i32, i32
  }
  func.func @transform_3(%arg0: i32) -> (i32, i32) {
    %c0_i32 = arith.constant 0 : i32
    %c0_i32_0 = arith.constant 0 : i32
    return %arg0, %c0_i32 : i32, i32
  }
  func.func @transform_4(%arg0: i32) -> (i32, i32) {
    %c0_i32 = arith.constant 0 : i32
    %c0_i32_0 = arith.constant 0 : i32
    return %arg0, %c0_i32 : i32, i32
  }
  func.func @transform_5(%arg0: i32) -> (i32, i32) {
    %c0_i32 = arith.constant 0 : i32
    %c0_i32_0 = arith.constant 0 : i32
    return %arg0, %c0_i32 : i32, i32
  }
}

</mosaic_0001>

<bundles_post_ra>
// kernel: resnet_block_1d_stride.2
= control target key start
LH: loop header
LB: loop body
LE: loop exit
PB: predicated region body
PF: predicated region fallthrough
CT: control target
= control target key end

     0   :  { %vm47_vm0 = vcmask 1043456   ;;  %v582_v2 = vmov 0.0   ;;  %s583_s19 = smov 1   ;;  %vm43_vm1 = vcmask 31744   ;;  %v26_v7 = vlaneseq  ;;  %s669_s1 = inlined_call_operand.vmem [shape: f32[4,256], index: 1, kind: input, shape index: {}]   ;;  %s670_s0 = inlined_call_operand.vmem [shape: f32[4,256], index: 0, kind: input, shape index: {}]   ;;  %s671_s2 = inlined_call_operand.vmem [shape: f32[5,8,4], index: 2, kind: input, shape index: {}]   ;;  %s672_s3 = inlined_call_operand.vmem [shape: f32[8,2], index: 3, kind: input, shape index: {}]   ;;  %s673_s4 = inlined_call_operand.vmem [shape: f32[8,256], index: 4, kind: output, shape index: {}]  }
   0x1   :  { %v18_v0 = vld [vmem:[%s669_s1] sm:$0xff]  ;;  %278 = vmatprep.mubr.f32.mxu0 %v582_v2  ;;  %118 = vmatprep.mubr.f32.mxu1 %v582_v2  ;;  %v549_v5 = vld [vmem:[%s671_s2 + $0x10] sm:$0xff]  ;;  %v553_v6 = vld [vmem:[%s671_s2 + $0x18] sm:$0xff]  ;;  %v585_v40 = vmov 0   ;;  %v586_v49 = vmov 1  }
   0x2   :  { %v17_v1 = vld [vmem:[%s670_s0] sm:$0xff]  ;;  %35 = vrot.lane.b32.xlu0 %v18_v0, %s583_s19  ;;  %v33_v3 = vcombine.high %v18_v0, %v18_v0  ;;  %s584_s0 = smov 127   ;;  %v27_v8 = vand.u32 127, %v26_v7  ;;  %v542_v15 = vld [vmem:[%s671_s2 + $0x8] sm:$0xff]  ;;  %576 = vset.pattern.permute.xlu1 %v586_v49 }
   0x3   :  { %22 = vrot.lane.b32.xlu1 %v17_v1, %s583_s19  ;;  %v20_v4 = vcombine.high %v17_v1, %v17_v1  ;;  %v557_v22 = vld [vmem:[%s671_s2 + $0x20] sm:$0xff]  ;;  %577 = vset.pattern.permute.xlu0 %v585_v40 }
   0x4   :  { %vm28_vm2 = vcmp.lt.s32.totalorder %v27_v8, 1  ;;  %vm373_vm3 = vcmp.lt.s32.totalorder %v27_v8, 127  ;;  %v31_v23 = vld [vmem:[%s671_s2] sm:$0xff]  ;;  %v460_v24 = vadd.s32 128, %v27_v8  ;;  %vm485_vm4 = vcmp.ge.s32.totalorder %v27_v8, 2 }
   0x5   :  { %550 = vmatprep.subr.msk.mxu0 %vm47_vm0, %v20_v4  ;;  %vm487_vm5 = vcmp.lt.s32.totalorder %v27_v8, 10  ;;  %v510_v50 = vld [vmem:[%s672_s3] sm:$0xff] }
   0x6   :  { %551 = vmatpush1.msk.msra.mxu0 %vm47_vm0, %v17_v1  ;;  %37 = vrot.lane.b32.xlu0 %v33_v3, %s583_s19  ;;  %v472_v25 = vand.u32 127, %v460_v24  ;;  %vm489_vm8 = vmand %vm485_vm4, %vm487_vm5 }
   0x7   :  { %24 = vrot.lane.b32.xlu1 %v20_v4, %s583_s19  ;;  %552 = vmatmul.mubr.msk.f32.vlgmr.msra.gmra.mrb[0].mxu0 %vm43_vm1, %v549_v5  ;;  %v561_v29 = vsel %vm489_vm8, 1.0, %v582_v2 }
   0x8   :  { %554 = vmatprep.subr.msk.mxu0 %vm47_vm0, %v33_v3  ;;  %360 = vmatprep.mubr.f32.mxu0 %v582_v2  ;;  %vm486_vm6 = vcmp.ge.s32.totalorder %v472_v25, 2  ;;  %vm488_vm7 = vcmp.lt.s32.totalorder %v472_v25, 10 }
   0x9   :  { %555 = vmatpush1.msk.msra.mxu0 %vm47_vm0, %v18_v0  ;;  %vm490_vm9 = vmand %vm486_vm6, %vm488_vm7 }
   0xa   :  { %369 = vrot.lane.b32.xlu0 %v17_v1, %s584_s0  ;;  %v562_v32 = vsel %vm490_vm9, 1.0, %v582_v2 }
   0xb   :  { %371 = vrot.lane.b32.xlu1 %v20_v4, %s584_s0 }
   0xf   :  { %556 = vmatmul.mubr.msk.f32.vlgmr.msra.gmra.mrb[0].mxu0 %vm43_vm1, %v553_v6 }
  0x10   :  { %451 = vmatprep.mubr.f32.mxu0 %v582_v2 }
  0x74   :  { %v36_v9 = vpop.permute.xlu0 %35 }
  0x75   :  { %v23_v10 = vpop.permute.xlu1 %22 }
  0x78   :  { %v38_v11 = vpop.permute.xlu0 %37 }
  0x79   :  { %v25_v12 = vpop.permute.xlu1 %24  ;;  %v39_v13 = vsel %vm28_vm2, %v36_v9, %v38_v11  ;;  %v40_v14 = vsel %vm28_vm2, %v38_v11, %v36_v9 }
  0x7a   :  { %543 = vmatprep.subr.msk.mxu1 %vm47_vm0, %v39_v13  ;;  %v29_v16 = vsel %vm28_vm2, %v23_v10, %v25_v12  ;;  %v30_v17 = vsel %vm28_vm2, %v25_v12, %v23_v10 }
  0x7b   :  { %544 = vmatpush1.msk.msra.mxu1 %vm47_vm0, %v40_v14 }
  0x7c   :  { %545 = vmatmul.mubr.msk.f32.vlgmr.msra.gmra.mrb[0].mxu1 %vm43_vm1, %v542_v15  ;;  %v370_v18 = vpop.permute.xlu0 %369  ;;  %546 = vmatprep.subr.msk.mxu1 %vm47_vm0, %v29_v16 }
  0x7d   :  { %v372_v19 = vpop.permute.xlu1 %371  ;;  %547 = vmatpush1.msk.msra.mxu1 %vm47_vm0, %v30_v17  ;;  %198 = vmatprep.mubr.f32.mxu1 %v582_v2 }
  0x7e   :  { %v374_v20 = vsel %vm373_vm3, %v370_v18, %v372_v19  ;;  %v375_v21 = vsel %vm373_vm3, %v372_v19, %v370_v18 }
  0x7f   :  { %558 = vmatprep.subr.msk.mxu0 %vm47_vm0, %v375_v21 }
  0x80   :  { %559 = vmatpush1.msk.msra.mxu0 %vm47_vm0, %v374_v20 }
  0x81   :  { %560 = vmatmul.mubr.msk.f32.vlgmr.msra.gmra.mrb[0].mxu0 %vm43_vm1, %v557_v22 }
  0x84   :  { %548 = vmatmul.mubr.msk.f32.vlgmr.msra.gmra.mrb[0].mxu1 %vm43_vm1, %v31_v23 }
 0x154   :  { %v453_v26 = vpop.f32.mrb[0].mxu0 }
 0x155   :  { %v455_v27 = vpop.f32.mrb[1].mxu0 }
 0x157   :  { %v200_v28 = vpop.f32.mrb[0].mxu1 }
 0x158   :  { %v563_v30 = vadd.f32 %v453_v26, %v200_v28  ;;  %v202_v31 = vpop.f32.mrb[1].mxu1 }
 0x159   :  { %v564_v33 = vadd.f32 %v455_v27, %v202_v31 }
 0x15a   :  { %v495_v34 = vmul.f32 %v563_v30, %v561_v29 }
 0x15b   :  { %v496_v35 = vmul.f32 %v564_v33, %v562_v32 }
 0x15c   :  { %v501_v36 = vmul.f32 %v495_v34, %v495_v34 }
 0x15d   :  { %v497_v37 = vadd.f32 %v496_v35, %v495_v34  ;;  %v502_v38 = vmul.f32 %v496_v35, %v496_v35 }
 0x15f   :  { %498 = vadd.xlane.f32.xlu0 %v497_v37  ;;  %v503_v39 = vadd.f32 %v502_v38, %v501_v36 }
 0x161   :  { %504 = vadd.xlane.f32.xlu1 %v503_v39 }
 0x1ec   :  { %v499_v41 = vpop.xlane.xlu0 %498 }
 0x1ed   :  { %v500_v42 = vmul.f32 0.0625, %v499_v41 }
 0x1ee   :  { %v505_v43 = vpop.xlane.xlu1 %504 }
 0x1ef   :  { %v507_v44 = vmul.f32 %v500_v42, %v500_v42  ;;  %v506_v45 = vmul.f32 0.0625, %v505_v43 }
 0x1f1   :  { %v508_v46 = vsub.f32 %v506_v45, %v507_v44 }
 0x1f3   :  { %v509_v47 = vmax.f32 %v508_v46, 0.0 }
 0x1f5   :  { %v511_v48 = vadd.f32 1e-05, %v509_v47 }
 0x1f7   :  { %580 = vrsqrt.f32 %v511_v48 }
 0x201   :  { %v581_v51 = vpop.eup %580 }
 0x202   :  { %v513_v52 = vmul.f32 %v581_v51, %v510_v50 }
 0x204   :  { %v514_v53 = vmul.f32 %v513_v52, %v500_v42 }
 0x206   :  { %516 = vrot.lane.b32.xlu0 %v514_v53, %s583_s19 }
 0x20a   :  { %529 = vperm.xlu0 %577, %v513_v52  }
 0x278   :  { %v517_v54 = vpop.permute.xlu0 %516 }
 0x279   :  { %v519_v55 = vsub.f32 %v510_v50, %v517_v54 }
 0x27b   :  { %522 = vperm.xlu1 %576, %v519_v55  }
 0x289   :  { %v530_v56 = vpop.permute.xlu0 %529 }
 0x28a   :  { %v532_v58 = vmul.f32 %v530_v56, %v495_v34  ;;  %v533_v59 = vmul.f32 %v530_v56, %v496_v35 }
 0x2fa   :  { %v523_v57 = vpop.permute.xlu1 %522 }
 0x2fb   :  { %v525_v60 = vmul.f32 %v561_v29, %v523_v57  ;;  %v526_v61 = vmul.f32 %v562_v32, %v523_v57 }
 0x2fd   :  { %v534_v62 = vadd.f32 %v532_v58, %v525_v60  ;;  %v535_v63 = vadd.f32 %v533_v59, %v526_v61 }
 0x2ff   :  { %536 = vst [vmem:[%s673_s4] sm:$0xff] %v534_v62  ;;  %537 = vst [vmem:[%s673_s4 + $0x8] sm:$0xff] %v535_v63 }

// kernel: resnet_block_1d_stride.3
= control target key start
LH: loop header
LB: loop body
LE: loop exit
PB: predicated region body
PF: predicated region fallthrough
CT: control target
= control target key end

     0   :  { %v660_v1 = vmov 0.0   ;;  %s661_s20 = smov 127   ;;  %s662_s21 = smov 1   ;;  %vm41_vm0 = vcmask 64512   ;;  %v26_v4 = vlaneseq  ;;  %v665_v42 = vmov 0   ;;  %s771_s0 = inlined_call_operand.vmem [shape: f32[8,256], index: 0, kind: input, shape index: {}]   ;;  %s772_s2 = inlined_call_operand.vmem [shape: f32[5,8,8], index: 2, kind: input, shape index: {}]   ;;  %s773_s1 = inlined_call_operand.vmem [shape: f32[4,256], index: 1, kind: input, shape index: {}]   ;;  %s774_s3 = inlined_call_operand.vmem [shape: f32[8,4], index: 3, kind: input, shape index: {}]   ;;  %s775_s4 = inlined_call_operand.vmem [shape: f32[8,3], index: 4, kind: input, shape index: {}]   ;;  %s776_s5 = inlined_call_operand.vmem [shape: f32[8,256], index: 5, kind: output, shape index: {}]  }
   0x1   :  { %v20_v0 = vld [vmem:[%s771_s0] sm:$0xff]  ;;  %259 = vmatprep.mubr.f32.mxu0 %v660_v1  ;;  %109 = vmatprep.mubr.f32.mxu1 %v660_v1  ;;  %v21_v2 = vld [vmem:[%s771_s0 + $0x8] sm:$0xff]  ;;  %v626_v3 = vld [vmem:[%s772_s2 + $0x10] sm:$0xff]  ;;  %s663_s26 = smov 2   ;;  %s664_s27 = smov 126   ;;  %vm531_vm11 = vcmask 1043456  }
   0x2   :  { %268 = vrot.lane.b32.xlu1 %v20_v0, %s661_s20  ;;  %32 = vrot.lane.b32.xlu0 %v20_v0, %s662_s21  ;;  %v715_v5 = vand.u32 127, %v26_v4  ;;  %v623_v14 = vld [vmem:[%s772_s2 + $0x8] sm:$0xff]  ;;  %v628_v15 = vld [vmem:[%s772_s2 + $0x18] sm:$0xff]  ;;  %vm527_vm12 = vcmask 31744   ;;  %v666_v54 = vmov 1   ;;  %v667_v59 = vmov 2  }
   0x3   :  { %195 = vmatprep.subr.mxu0 %v21_v2  ;;  %v31_v24 = vld [vmem:[%s772_s2] sm:$0xff]  ;;  %653 = vset.pattern.permute.xlu0 %v665_v42 }
   0x4   :  { %196 = vmatpush1.msra.mxu0 %v20_v0  ;;  %vm272_vm1 = vcmp.lt.s32.totalorder %v715_v5, 127  ;;  %vm36_vm2 = vcmp.lt.s32.totalorder %v715_v5, 1  ;;  %vm28_vm3 = vcmp.lt.s32.totalorder %v715_v5, 2  ;;  %vm357_vm4 = vcmp.lt.s32.totalorder %v715_v5, 126  ;;  %v630_v25 = vld [vmem:[%s772_s2 + $0x20] sm:$0xff]  ;;  %654 = vset.pattern.permute.xlu1 %v666_v54 }
   0x5   :  { %627 = vmatmul.mubr.msk.f32.vlgmr.msra.gmra.mrb[0].mxu0 %vm41_vm0, %v626_v3  ;;  %v438_v26 = vadd.s32 128, %v715_v5  ;;  %vm463_vm5 = vcmp.ge.s32.totalorder %v715_v5, 2  ;;  %vm465_vm6 = vcmp.lt.s32.totalorder %v715_v5, 10  ;;  %v516_v43 = vld [vmem:[%s773_s1] sm:$0xff] }
   0x6   :  { %270 = vrot.lane.b32.xlu1 %v21_v2, %s661_s20  ;;  %34 = vrot.lane.b32.xlu0 %v21_v2, %s662_s21  ;;  %vm467_vm9 = vmand %vm463_vm5, %vm465_vm6  ;;  %v526_v44 = vcombine.high %v516_v43, %v516_v43  ;;  %v517_v45 = vld [vmem:[%s774_s3] sm:$0xff] }
   0x7   :  { %344 = vmatprep.mubr.f32.mxu0 %v660_v1  ;;  %v450_v27 = vand.u32 127, %v438_v26  ;;  %v632_v30 = vsel %vm467_vm9, 1.0, %v660_v1  ;;  %v488_v55 = vld [vmem:[%s775_s4] sm:$0xff] }
   0x9   :  { %vm464_vm7 = vcmp.ge.s32.totalorder %v450_v27, 2  ;;  %vm466_vm8 = vcmp.lt.s32.totalorder %v450_v27, 10 }
   0xa   :  { %24 = vrot.lane.b32.xlu1 %v21_v2, %s663_s26  ;;  %22 = vrot.lane.b32.xlu0 %v20_v0, %s663_s26  ;;  %vm468_vm10 = vmand %vm464_vm7, %vm466_vm8 }
   0xb   :  { %v633_v34 = vsel %vm468_vm10, 1.0, %v660_v1 }
   0xe   :  { %355 = vrot.lane.b32.xlu1 %v21_v2, %s664_s27  ;;  %353 = vrot.lane.b32.xlu0 %v20_v0, %s664_s27 }
  0x74   :  { %v269_v6 = vpop.permute.xlu1 %268  ;;  %v33_v7 = vpop.permute.xlu0 %32 }
  0x78   :  { %v271_v8 = vpop.permute.xlu1 %270  ;;  %v35_v9 = vpop.permute.xlu0 %34 }
  0x79   :  { %v273_v10 = vsel %vm272_vm1, %v269_v6, %v271_v8  ;;  %v37_v11 = vsel %vm36_vm2, %v33_v7, %v35_v9  ;;  %v274_v12 = vsel %vm272_vm1, %v271_v8, %v269_v6  ;;  %v38_v13 = vsel %vm36_vm2, %v35_v9, %v33_v7 }
  0x7a   :  { %45 = vmatprep.subr.mxu1 %v37_v11  ;;  %280 = vmatprep.subr.mxu0 %v274_v12 }
  0x7b   :  { %46 = vmatpush1.msra.mxu1 %v38_v13  ;;  %281 = vmatpush1.msra.mxu0 %v273_v10 }
  0x7c   :  { %v25_v16 = vpop.permute.xlu1 %24  ;;  %624 = vmatmul.mubr.msk.f32.vlgmr.msra.gmra.mrb[0].mxu1 %vm41_vm0, %v623_v14  ;;  %v23_v17 = vpop.permute.xlu0 %22  ;;  %629 = vmatmul.mubr.msk.f32.vlgmr.msra.gmra.mrb[0].mxu0 %vm41_vm0, %v628_v15 }
  0x7d   :  { %v30_v18 = vsel %vm28_vm3, %v25_v16, %v23_v17  ;;  %v29_v19 = vsel %vm28_vm3, %v23_v17, %v25_v16  ;;  %183 = vmatprep.mubr.f32.mxu1 %v660_v1  ;;  %429 = vmatprep.mubr.f32.mxu0 %v660_v1 }
  0x7e   :  { %119 = vmatprep.subr.mxu1 %v29_v19 }
  0x7f   :  { %120 = vmatpush1.msra.mxu1 %v30_v18 }
  0x80   :  { %v356_v20 = vpop.permute.xlu1 %355  ;;  %v354_v21 = vpop.permute.xlu0 %353  ;;  %634 = vmatprep.subr.msk.mxu1 %vm531_vm11, %v526_v44 }
  0x81   :  { %v358_v22 = vsel %vm357_vm4, %v354_v21, %v356_v20  ;;  %v359_v23 = vsel %vm357_vm4, %v356_v20, %v354_v21 }
  0x82   :  { %365 = vmatprep.subr.mxu0 %v359_v23 }
  0x83   :  { %366 = vmatpush1.msra.mxu0 %v358_v22 }
  0x84   :  { %625 = vmatmul.mubr.msk.f32.vlgmr.msra.gmra.mrb[0].mxu1 %vm41_vm0, %v31_v24  ;;  %631 = vmatmul.mubr.msk.f32.vlgmr.msra.gmra.mrb[0].mxu0 %vm41_vm0, %v630_v25 }
  0x85   :  { %600 = vmatprep.mubr.f32.mxu1 %v660_v1  ;;  %635 = vmatpush1.msk.msra.mxu1 %vm531_vm11, %v516_v43 }
  0x88   :  { %636 = vmatmul.mubr.msk.f32.vlgmr.msra.gmra.mrb[2].mxu1 %vm527_vm12, %v517_v45 }
 0x157   :  { %v185_v28 = vpop.f32.mrb[0].mxu1  ;;  %v431_v29 = vpop.f32.mrb[0].mxu0 }
 0x158   :  { %v637_v31 = vadd.f32 %v431_v29, %v185_v28  ;;  %v187_v32 = vpop.f32.mrb[1].mxu1  ;;  %v433_v33 = vpop.f32.mrb[1].mxu0 }
 0x159   :  { %v638_v35 = vadd.f32 %v433_v33, %v187_v32 }
 0x15a   :  { %v473_v36 = vmul.f32 %v637_v31, %v632_v30 }
 0x15b   :  { %v474_v37 = vmul.f32 %v638_v35, %v633_v34  ;;  %v602_v62 = vpop.f32.mrb[2].mxu1 }
 0x15c   :  { %v479_v38 = vmul.f32 %v473_v36, %v473_v36  ;;  %v604_v63 = vpop.f32.mrb[3].mxu1 }
 0x15d   :  { %v475_v39 = vadd.f32 %v474_v37, %v473_v36  ;;  %v480_v40 = vmul.f32 %v474_v37, %v474_v37 }
 0x15f   :  { %476 = vadd.xlane.f32.xlu0 %v475_v39  ;;  %v481_v41 = vadd.f32 %v480_v40, %v479_v38 }
 0x161   :  { %482 = vadd.xlane.f32.xlu1 %v481_v41 }
 0x1ec   :  { %v477_v46 = vpop.xlane.xlu0 %476 }
 0x1ed   :  { %v478_v47 = vmul.f32 0.0625, %v477_v46 }
 0x1ee   :  { %v483_v48 = vpop.xlane.xlu1 %482 }
 0x1ef   :  { %v485_v49 = vmul.f32 %v478_v47, %v478_v47  ;;  %v484_v50 = vmul.f32 0.0625, %v483_v48 }
 0x1f1   :  { %v486_v51 = vsub.f32 %v484_v50, %v485_v49 }
 0x1f3   :  { %v487_v52 = vmax.f32 %v486_v51, 0.0 }
 0x1f5   :  { %v489_v53 = vadd.f32 1e-05, %v487_v52 }
 0x1f7   :  { %658 = vrsqrt.f32 %v489_v53 }
 0x201   :  { %v659_v56 = vpop.eup %658 }
 0x202   :  { %v491_v57 = vmul.f32 %v659_v56, %v488_v55 }
 0x204   :  { %v492_v58 = vmul.f32 %v491_v57, %v478_v47 }
 0x206   :  { %494 = vrot.lane.b32.xlu0 %v492_v58, %s662_s21 }
 0x20a   :  { %507 = vperm.xlu0 %653, %v491_v57  }
 0x20e   :  { %656 = vset.pattern.permute.xlu0 %v667_v59 }
 0x278   :  { %v495_v60 = vpop.permute.xlu0 %494 }
 0x279   :  { %v497_v61 = vsub.f32 %v488_v55, %v495_v60 }
 0x27b   :  { %500 = vperm.xlu1 %654, %v497_v61  }
 0x27f   :  { %655 = vset.pattern.permute.xlu1 %v667_v59 }
 0x280   :  { %520 = vperm.xlu1 %655, %v488_v55  }
 0x289   :  { %v508_v0 = vpop.permute.xlu0 %507 }
 0x28a   :  { %v510_v4 = vmul.f32 %v508_v0, %v473_v36  ;;  %v511_v6 = vmul.f32 %v508_v0, %v474_v37 }
 0x2fa   :  { %v501_v1 = vpop.permute.xlu1 %500 }
 0x2fb   :  { %v503_v2 = vmul.f32 %v632_v30, %v501_v1  ;;  %v504_v3 = vmul.f32 %v633_v34, %v501_v1 }
 0x2fd   :  { %v512_v7 = vadd.f32 %v510_v4, %v503_v2  ;;  %v513_v8 = vadd.f32 %v511_v6, %v504_v3 }
 0x2ff   :  { %v521_v9 = vpop.permute.xlu1 %520  ;;  %v514_v12 = vmax.f32 %v512_v7, 0.0  ;;  %v515_v13 = vmax.f32 %v513_v8, 0.0 }
 0x300   :  { %v523_v10 = vmul.f32 %v632_v30, %v521_v9  ;;  %v524_v11 = vmul.f32 %v633_v34, %v521_v9 }
 0x302   :  { %v603_v14 = vadd.f32 %v602_v62, %v523_v10  ;;  %v605_v15 = vadd.f32 %v604_v63, %v524_v11 }
 0x304   :  { %v607_v16 = vadd.f32 %v603_v14, %v514_v12  ;;  %v608_v17 = vadd.f32 %v605_v15, %v515_v13 }
 0x306   :  { %v609_v18 = vmax.f32 %v607_v16, 0.0  ;;  %v610_v19 = vmax.f32 %v608_v17, 0.0 }
 0x308   :  { %613 = vrot.lane.b32.xlu0 %v610_v19, %s664_s27  ;;  %611 = vrot.lane.b32.xlu1 %v609_v18, %s664_s27 }
 0x37a   :  { %v614_v20 = vpop.permute.xlu0 %613  ;;  %v612_v21 = vpop.permute.xlu1 %611 }
 0x37b   :  { %v615_v22 = vsel %vm357_vm4, %v612_v21, %v614_v20  ;;  %v616_v23 = vsel %vm357_vm4, %v614_v20, %v612_v21 }
 0x37c   :  { %617 = vst [vmem:[%s776_s5] sm:$0xff] %v615_v22  ;;  %618 = vst [vmem:[%s776_s5 + $0x8] sm:$0xff] %v616_v23 }

</bundles_post_ra>
